<compile_context>
chip_gen: v6e
topology: v6e:2x2x1
jax: 0.10.0
libtpu: 0.0.40
codegen_flags: <defaults>
</compile_context>

<pallas_src>
import functools

import jax
import jax.numpy as jnp
from jax.experimental import pallas as pl
from jax.experimental.pallas import tpu as pltpu

LEAKY_SLOPE = 0.01  # F.leaky_relu default


# ----------------------------------------------------------------------------
# Fused Pallas kernel: the whole GraphConv stack in one call
# ----------------------------------------------------------------------------
def fused_graphsage_kernel(a_ref, x_ref, w_ref, b_ref, o_ref, *, num_layers):
    a = a_ref[...]          # (N, N)   bf16  normalized adjacency (resident in VMEM)
    h = x_ref[...]          # (N, DP)  bf16  padded node features
    for l in range(num_layers):          # static unroll over layers
        w = w_ref[l]                     # (DP, DP) bf16 (zero-padded)
        b = b_ref[l]                     # (1, DP)  f32  (zero-padded)
        # feature transform on MXU (f32 accumulation)
        xw = jnp.dot(h, w, preferred_element_type=jnp.float32)
        # neighborhood aggregation A_norm @ (X W) on MXU
        agg = jnp.dot(a, xw.astype(a.dtype), preferred_element_type=jnp.float32)
        z = agg + b
        z = jnp.where(z > 0, z, LEAKY_SLOPE * z)   # LeakyReLU(0.01)
        # dropout: identity (eval mode)
        h = z.astype(x_ref.dtype)                  # bf16 for next layer's MXU pass
    o_ref[...] = h.astype(o_ref.dtype)


def _round_up(x, m):
    return ((x + m - 1) // m) * m


def graphsage_encoder_forward(a_norm, features, params, out_dim):
    """Fused forward for the whole encoder stack (eval-mode dropout)."""
    n = a_norm.shape[0]
    num_layers = len(params)
    dims = [features.shape[1]] + [w.shape[1] for (w, _) in params]
    dp = max(128, _round_up(max(dims), 128))   # lane-dense padded feature dim

    # Zero-pad features / weights / biases to the lane-dense width. Zero columns
    # stay zero through (matmul + zero bias + leaky_relu), so the padded lanes
    # never contaminate the logical output.
    x_p = jnp.zeros((n, dp), jnp.bfloat16)
    x_p = x_p.at[:, : features.shape[1]].set(features.astype(jnp.bfloat16))

    w_stack = jnp.zeros((num_layers, dp, dp), jnp.bfloat16)
    b_stack = jnp.zeros((num_layers, 1, dp), jnp.float32)
    for l, (w, b) in enumerate(params):
        w_stack = w_stack.at[l, : w.shape[0], : w.shape[1]].set(w.astype(jnp.bfloat16))
        b_stack = b_stack.at[l, 0, : b.shape[0]].set(b.astype(jnp.float32))

    a_bf16 = a_norm.astype(jnp.bfloat16)

    kernel = functools.partial(fused_graphsage_kernel, num_layers=num_layers)

    cost = pl.CostEstimate(
        flops=num_layers * (2 * n * dp * dp + 2 * n * n * dp),
        transcendentals=0,
        bytes_accessed=(a_bf16.size * 2 + x_p.size * 2
                        + w_stack.size * 2 + b_stack.size * 4 + n * dp * 4),
    )

    out_p = pl.pallas_call(
        kernel,
        out_shape=jax.ShapeDtypeStruct((n, dp), jnp.float32),
        # Everything fits in VMEM at these sizes -> single block, no grid.
        in_specs=[
            pl.BlockSpec((n, n), lambda: (0, 0)),
            pl.BlockSpec((n, dp), lambda: (0, 0)),
            pl.BlockSpec((num_layers, dp, dp), lambda: (0, 0, 0)),
            pl.BlockSpec((num_layers, 1, dp), lambda: (0, 0, 0)),
        ],
        out_specs=pl.BlockSpec((n, dp), lambda: (0, 0)),
        compiler_params=pltpu.CompilerParams(vmem_limit_bytes=32 << 20),
        cost_estimate=cost,
    )(a_bf16, x_p, w_stack, b_stack)

    return out_p[:, :out_dim]


# ----------------------------------------------------------------------------
# Glue: normalized adjacency (DGL GraphConv norm="both")
# ----------------------------------------------------------------------------
def symmetric_norm_adj(adj):
    # adj[i, j] = weight of edge j -> i ; aggregation h_i = sum_j A[i, j] h_j
    in_deg = jnp.sum(adj, axis=1)
    out_deg = jnp.sum(adj, axis=0)
    d_in = jnp.where(in_deg > 0, 1.0 / jnp.sqrt(in_deg), 0.0)
    d_out = jnp.where(out_deg > 0, 1.0 / jnp.sqrt(out_deg), 0.0)
    return d_in[:, None] * adj * d_out[None, :]


# ----------------------------------------------------------------------------
# Parameter init (Xavier-uniform weights, zero bias: matches GraphConv defaults)
# ----------------------------------------------------------------------------
def init_encoder_params(key, in_dim, hidden_dim, out_dim, num_layers):
    hidden_dim = hidden_dim if num_layers > 1 else out_dim
    dims = [in_dim, hidden_dim]
    for _ in range(num_layers - 2):
        dims.append(hidden_dim)
    if num_layers > 1:
        dims.append(out_dim)
    params = []
    for i in range(len(dims) - 1):
        key, wk = jax.random.split(key)
        fan_in, fan_out = dims[i], dims[i + 1]
        limit = jnp.sqrt(6.0 / (fan_in + fan_out))
        w = jax.random.uniform(wk, (fan_in, fan_out), jnp.float32, -limit, limit)
        b = jnp.zeros((fan_out,), jnp.float32)
        params.append((w, b))
    return params


# ----------------------------------------------------------------------------
# Pure-JAX f32 reference (for a loose numerical sanity check vs. bf16 kernel)
# ----------------------------------------------------------------------------
def reference_forward(a_norm, features, params):
    h = features
    for (w, b) in params:
        h = a_norm @ (h @ w) + b[None, :]
        h = jnp.where(h > 0, h, LEAKY_SLOPE * h)
    return h


# ----------------------------------------------------------------------------
# Main
# ----------------------------------------------------------------------------
if __name__ == "__main__":
    key = jax.random.PRNGKey(0)

    N = 64           # number of graph nodes
    IN_DIM = 32
    HIDDEN_DIM = 32
    OUT_DIM = 16
    NUM_LAYERS = 3
    DROPOUT = 0.1    # eval-mode -> identity
    NORM = "both"

    k_feat, k_adj, k_param = jax.random.split(key, 3)

    # Deterministic random graph: symmetric adjacency + self-loops
    rand = jax.random.uniform(k_adj, (N, N))
    adj = (rand < 0.15).astype(jnp.float32)
    adj = jnp.maximum(adj, adj.T)                            # undirected
    adj = jnp.maximum(adj, jnp.eye(N, dtype=jnp.float32))    # self-loops
    a_norm = symmetric_norm_adj(adj)                         # norm="both"

    features = jax.random.normal(k_feat, (N, IN_DIM), jnp.float32)
    params = init_encoder_params(k_param, IN_DIM, HIDDEN_DIM, OUT_DIM, NUM_LAYERS)

    out = graphsage_encoder_forward(a_norm, features, params, OUT_DIM)
    out = jax.block_until_ready(out)

    assert out.shape == (N, OUT_DIM), out.shape
    assert jnp.all(jnp.isfinite(out))

    # Loose check against f32 reference (kernel uses bf16 operands on the MXU).
    ref = reference_forward(a_norm, features, params)
    tol = 5e-2 * float(jnp.max(jnp.abs(ref))) + 1e-2
    assert float(jnp.max(jnp.abs(out - ref))) < tol

    print("KERNEL_OK")
</pallas_src>

<mosaic_0001>
module attributes {stable_mosaic.version = 11 : i64} {
  func.func @fused_graphsage_kernel(%arg0: memref<64x64xbf16, #tpu.memory_space<vmem>>, %arg1: memref<64x128xbf16, #tpu.memory_space<vmem>>, %arg2: memref<3x128x128xbf16, #tpu.memory_space<vmem>>, %arg3: memref<3x1x128xf32, #tpu.memory_space<vmem>>, %arg4: memref<64x128xf32, #tpu.memory_space<vmem>>) attributes {dimension_semantics = [], scalar_prefetch = 0 : i64, scratch_operands = 0 : i64, tpu.core_type = #tpu.core_type<tc>} {
    %c0 = arith.constant 0 : index
    %c0_0 = arith.constant 0 : index
    %0 = vector.load %arg0[%c0, %c0_0] : memref<64x64xbf16, #tpu.memory_space<vmem>>, vector<64x64xbf16>
    %c0_1 = arith.constant 0 : index
    %c0_2 = arith.constant 0 : index
    %1 = vector.load %arg1[%c0_1, %c0_2] : memref<64x128xbf16, #tpu.memory_space<vmem>>, vector<64x128xbf16>
    %c0_3 = arith.constant 0 : index
    %c0_4 = arith.constant 0 : index
    %c0_5 = arith.constant 0 : index
    %2 = vector.load %arg2[%c0_3, %c0_4, %c0_5] : memref<3x128x128xbf16, #tpu.memory_space<vmem>>, vector<1x128x128xbf16>
    %3 = vector.shape_cast %2 : vector<1x128x128xbf16> to vector<128x128xbf16>
    %c0_6 = arith.constant 0 : index
    %c0_7 = arith.constant 0 : index
    %c0_8 = arith.constant 0 : index
    %4 = vector.load %arg3[%c0_6, %c0_7, %c0_8] : memref<3x1x128xf32, #tpu.memory_space<vmem>>, vector<1x1x128xf32>
    %5 = vector.shape_cast %4 : vector<1x1x128xf32> to vector<1x128xf32>
    %cst = arith.constant dense<0.000000e+00> : vector<64x128xf32>
    %6 = tpu.matmul %1, %3, %cst {dimension_numbers = #tpu.dot_dimension_numbers<[1], [0], [0], [1], [0, 0, 1, 1], [], []>} : vector<64x128xbf16>, vector<128x128xbf16>, vector<64x128xf32> -> vector<64x128xf32>
    %7 = arith.truncf %6 : vector<64x128xf32> to vector<64x128xbf16>
    %cst_9 = arith.constant dense<0.000000e+00> : vector<64x128xf32>
    %8 = tpu.matmul %0, %7, %cst_9 {dimension_numbers = #tpu.dot_dimension_numbers<[1], [0], [0], [1], [0, 0, 1, 1], [], []>} : vector<64x64xbf16>, vector<64x128xbf16>, vector<64x128xf32> -> vector<64x128xf32>
    %9 = vector.broadcast %5 : vector<1x128xf32> to vector<64x128xf32>
    %10 = arith.addf %8, %9 : vector<64x128xf32>
    %cst_10 = arith.constant 0.000000e+00 : f32
    %11 = vector.broadcast %cst_10 : f32 to vector<64x128xf32>
    %12 = arith.cmpf ogt, %10, %11 : vector<64x128xf32>
    %cst_11 = arith.constant 0.00999999977 : f32
    %13 = vector.broadcast %cst_11 : f32 to vector<64x128xf32>
    %14 = arith.mulf %13, %10 : vector<64x128xf32>
    %15 = arith.select %12, %10, %14 : vector<64x128xi1>, vector<64x128xf32>
    %16 = arith.truncf %15 : vector<64x128xf32> to vector<64x128xbf16>
    %c1 = arith.constant 1 : index
    %c0_12 = arith.constant 0 : index
    %c0_13 = arith.constant 0 : index
    %17 = vector.load %arg2[%c1, %c0_12, %c0_13] : memref<3x128x128xbf16, #tpu.memory_space<vmem>>, vector<1x128x128xbf16>
    %18 = vector.shape_cast %17 : vector<1x128x128xbf16> to vector<128x128xbf16>
    %c1_14 = arith.constant 1 : index
    %c0_15 = arith.constant 0 : index
    %c0_16 = arith.constant 0 : index
    %19 = vector.load %arg3[%c1_14, %c0_15, %c0_16] : memref<3x1x128xf32, #tpu.memory_space<vmem>>, vector<1x1x128xf32>
    %20 = vector.shape_cast %19 : vector<1x1x128xf32> to vector<1x128xf32>
    %cst_17 = arith.constant dense<0.000000e+00> : vector<64x128xf32>
    %21 = tpu.matmul %16, %18, %cst_17 {dimension_numbers = #tpu.dot_dimension_numbers<[1], [0], [0], [1], [0, 0, 1, 1], [], []>} : vector<64x128xbf16>, vector<128x128xbf16>, vector<64x128xf32> -> vector<64x128xf32>
    %22 = arith.truncf %21 : vector<64x128xf32> to vector<64x128xbf16>
    %cst_18 = arith.constant dense<0.000000e+00> : vector<64x128xf32>
    %23 = tpu.matmul %0, %22, %cst_18 {dimension_numbers = #tpu.dot_dimension_numbers<[1], [0], [0], [1], [0, 0, 1, 1], [], []>} : vector<64x64xbf16>, vector<64x128xbf16>, vector<64x128xf32> -> vector<64x128xf32>
    %24 = vector.broadcast %20 : vector<1x128xf32> to vector<64x128xf32>
    %25 = arith.addf %23, %24 : vector<64x128xf32>
    %cst_19 = arith.constant 0.000000e+00 : f32
    %26 = vector.broadcast %cst_19 : f32 to vector<64x128xf32>
    %27 = arith.cmpf ogt, %25, %26 : vector<64x128xf32>
    %cst_20 = arith.constant 0.00999999977 : f32
    %28 = vector.broadcast %cst_20 : f32 to vector<64x128xf32>
    %29 = arith.mulf %28, %25 : vector<64x128xf32>
    %30 = arith.select %27, %25, %29 : vector<64x128xi1>, vector<64x128xf32>
    %31 = arith.truncf %30 : vector<64x128xf32> to vector<64x128xbf16>
    %c2 = arith.constant 2 : index
    %c0_21 = arith.constant 0 : index
    %c0_22 = arith.constant 0 : index
    %32 = vector.load %arg2[%c2, %c0_21, %c0_22] : memref<3x128x128xbf16, #tpu.memory_space<vmem>>, vector<1x128x128xbf16>
    %33 = vector.shape_cast %32 : vector<1x128x128xbf16> to vector<128x128xbf16>
    %c2_23 = arith.constant 2 : index
    %c0_24 = arith.constant 0 : index
    %c0_25 = arith.constant 0 : index
    %34 = vector.load %arg3[%c2_23, %c0_24, %c0_25] : memref<3x1x128xf32, #tpu.memory_space<vmem>>, vector<1x1x128xf32>
    %35 = vector.shape_cast %34 : vector<1x1x128xf32> to vector<1x128xf32>
    %cst_26 = arith.constant dense<0.000000e+00> : vector<64x128xf32>
    %36 = tpu.matmul %31, %33, %cst_26 {dimension_numbers = #tpu.dot_dimension_numbers<[1], [0], [0], [1], [0, 0, 1, 1], [], []>} : vector<64x128xbf16>, vector<128x128xbf16>, vector<64x128xf32> -> vector<64x128xf32>
    %37 = arith.truncf %36 : vector<64x128xf32> to vector<64x128xbf16>
    %cst_27 = arith.constant dense<0.000000e+00> : vector<64x128xf32>
    %38 = tpu.matmul %0, %37, %cst_27 {dimension_numbers = #tpu.dot_dimension_numbers<[1], [0], [0], [1], [0, 0, 1, 1], [], []>} : vector<64x64xbf16>, vector<64x128xbf16>, vector<64x128xf32> -> vector<64x128xf32>
    %39 = vector.broadcast %35 : vector<1x128xf32> to vector<64x128xf32>
    %40 = arith.addf %38, %39 : vector<64x128xf32>
    %cst_28 = arith.constant 0.000000e+00 : f32
    %41 = vector.broadcast %cst_28 : f32 to vector<64x128xf32>
    %42 = arith.cmpf ogt, %40, %41 : vector<64x128xf32>
    %cst_29 = arith.constant 0.00999999977 : f32
    %43 = vector.broadcast %cst_29 : f32 to vector<64x128xf32>
    %44 = arith.mulf %43, %40 : vector<64x128xf32>
    %45 = arith.select %42, %40, %44 : vector<64x128xi1>, vector<64x128xf32>
    %46 = arith.truncf %45 : vector<64x128xf32> to vector<64x128xbf16>
    %47 = arith.extf %46 : vector<64x128xbf16> to vector<64x128xf32>
    %c0_30 = arith.constant 0 : index
    %c0_31 = arith.constant 0 : index
    %48 = vector.load %arg4[%c0_30, %c0_31] : memref<64x128xf32, #tpu.memory_space<vmem>>, vector<64x128xf32>
    tpu.vector_store %arg4[%c0_30, %c0_31], %47 {strides = array<i32>} : memref<64x128xf32, #tpu.memory_space<vmem>>, vector<64x128xf32>,
    return
  }
}

</mosaic_0001>

<bundles_post_ra>
// kernel: tpu_custom_call.1
= control target key start
LH: loop header
LB: loop body
LE: loop exit
PB: predicated region body
PF: predicated region fallthrough
CT: control target
= control target key end

     0   :  { %9 = vsyncpa [#allocation3], 0  ;;  %s1311_s0 = inlined_call_operand.hbm [shape: bf16[64,64], index: 0, kind: input, shape index: {}]   ;;  %s1312_s1 = inlined_call_operand.hbm [shape: bf16[64,128], index: 1, kind: input, shape index: {}]   ;;  %s1313_s2 = inlined_call_operand.hbm [shape: bf16[3,128,128], index: 2, kind: input, shape index: {}]   ;;  %s1314_s3 = inlined_call_operand.vmem [shape: f32[3,1,128], index: 3, kind: input, shape index: {}]   ;;  %s1315_s4 = inlined_call_operand.hbm [shape: f32[64,128], index: 4, kind: output, shape index: {}]  }
   0x1   :  { %10 = vsyncpa [#allocation6], 0 }
   0x2   :  { %11 = vsyncpa [#allocation4], 0  ;;  %s1225_s15 = smov [#allocation5]   ;;  %s1226_s17 = smov [#allocation2]  }
   0x3   :  { %s29_s16 = sshll.u32 %s1225_s15, 4  ;;  %s17_s18 = sshll.u32 %s1226_s17, 4  ;;  %s30_s16 = int_to_ptr.vmem [resolvable:$true] %s29_s16  ;;  %s18_s18 = int_to_ptr.vmem [resolvable:$true] %s17_s18 }
   0x4   :  { %s1147_s19 = scalar_lea.vmem %s30_s16, 512  ;;  %p1152_p1 = scmp.lt.s32.totalorder %s30_s16, %s30_s16 }
   0x5   :  { %p1148_p0 = scmp.ne.s32.totalorder %s30_s16, %s1147_s19  ;;  %p1153_p2 = scmp.lt.s32.totalorder %s1147_s19, %s1147_s19 }
   0x7   :  { %p1154_p3 = por %p1153_p2, %p1152_p1 }
   0x9   :  { %p1155_p4 = pnand %p1154_p3, %p1148_p0 }
   0xb   :  { %1158 = shalt.err (!%p1155_p4)
}
   0xc   :  { %s1227_s20 = smov 64   ;;  %s1228_s21 = smov 4  }
   0xd   :  { %35 = dma.hbm_to_vmem [thread:$0]  %s1312_s1, 512, %s30_s16, [#allocation6], %s1227_s20, %s1227_s20, %s1228_s21  }
   0xe   :  { %s1167_s24 = scalar_lea.vmem %s18_s18, 512  ;;  %p1172_p6 = scmp.lt.s32.totalorder %s18_s18, %s18_s18 }
   0xf   :  { %p1168_p5 = scmp.ne.s32.totalorder %s18_s18, %s1167_s24  ;;  %p1173_p7 = scmp.lt.s32.totalorder %s1167_s24, %s1167_s24 }
  0x11   :  { %p1174_p8 = por %p1173_p7, %p1172_p6 }
  0x13   :  { %p1175_p9 = pnand %p1174_p8, %p1168_p5 }
  0x15   :  { %1178 = shalt.err (!%p1175_p9)
}
  0x16   :  { %23 = dma.hbm_to_vmem [thread:$0]  %s1311_s0, 512, %s18_s18, [#allocation3], %s1227_s20, %s1227_s20, %s1228_s21  }
  0x17   :  { %s1229_s27 = smov [#allocation7]  }
  0x18   :  { %s41_s28 = sshll.u32 %s1229_s27, 4  ;;  %s42_s28 = int_to_ptr.vmem [resolvable:$true] %s41_s28 }
  0x19   :  { %s1187_s29 = scalar_lea.vmem %s42_s28, 3072  ;;  %p1192_p11 = scmp.lt.s32.totalorder %s42_s28, %s42_s28 }
  0x1a   :  { %p1188_p10 = scmp.ne.s32.totalorder %s42_s28, %s1187_s29  ;;  %p1193_p12 = scmp.lt.s32.totalorder %s1187_s29, %s1187_s29 }
  0x1c   :  { %p1194_p13 = por %p1193_p12, %p1192_p11 }
  0x1e   :  { %p1195_p0 = pnand %p1194_p13, %p1188_p10 }
  0x20   :  { %1198 = shalt.err (!%p1195_p0)
}
  0x21   :  { %47 = dma.hbm_to_vmem [thread:$0]  %s1313_s2, 3072, %s42_s28, [#allocation6], %s1227_s20, %s1227_s20, %s1228_s21  }
  0x22   :  { %1219 = dma.done.wait [#allocation3], 512  }
  0x23   :  { %1220 = vsyncadd [#allocation3], 4294966784 }
  0x24   :  { %1221 = dma.done.wait [#allocation6], 3584  }
  0x25   :  { %1222 = vsyncadd [#allocation6], 4294963712  ;;  %v1107_v0 = vld [vmem:[#allocation7 + $0x38] sm:$0xff]   ;;  %v1108_v1 = vld [vmem:[#allocation7 + $0x30] sm:$0xff]   ;;  %vm260_vm0 = vcmask 523264  }
  0x26   :  { %979 = vmatprep.subr.bf16.mxu0 %v1107_v0  ;;  %v1109_v2 = vld [vmem:[#allocation7 + $0x28] sm:$0xff]   ;;  %v1110_v3 = vld [vmem:[#allocation7 + $0x20] sm:$0xff]   ;;  %v1111_v5 = vld [vmem:[#allocation7 + $0x18] sm:$0xff]  }
  0x27   :  { %980 = vmatpush3.bf16.msra.mxu0 %v1107_v0  ;;  %v1115_v4 = vld [vmem:[#allocation5] sm:$0xff]   ;;  %v1112_v6 = vld [vmem:[#allocation7 + $0x10] sm:$0xff]   ;;  %v1113_v7 = vld [vmem:[#allocation7 + $0x8] sm:$0xff]  }
  0x28   :  { %981 = vmatprep.subr.bf16.mxu0 %v1108_v1  ;;  %995 = vmatprep.mubr.bf16.mxu0 %v1115_v4  ;;  %v1114_v8 = vld [vmem:[#allocation7] sm:$0xff]   ;;  %v1116_v9 = vld [vmem:[#allocation5 + $0x8] sm:$0xff]   ;;  %v1117_v10 = vld [vmem:[#allocation5 + $0x10] sm:$0xff]  }
  0x29   :  { %v1118_v11 = vld [vmem:[#allocation5 + $0x18] sm:$0xff]   ;;  %v1267_v12 = vld [vmem:[#allocation2] sm:$0xff]   ;;  %v1273_v26 = vld [vmem:[#allocation2 + $0x8] sm:$0xff]  }
  0x2a   :  { %1011 = vmatprep.mubr.msk.bf16.mxu1 %vm260_vm0, %v1267_v12  ;;  %v1123_v25 = vld [vmem:[#allocation7 + $0x78] sm:$0xff]   ;;  %v1275_v27 = vld [vmem:[#allocation2 + $0x10] sm:$0xff]   ;;  %v1125_v29 = vld [vmem:[#allocation7 + $0x68] sm:$0xff]  }
  0x2b   :  { %982 = vmatpush3.bf16.msra.mxu0 %v1108_v1  ;;  %v1124_v28 = vld [vmem:[#allocation7 + $0x70] sm:$0xff]   ;;  %v1281_v30 = vld [vmem:[#allocation2 + $0x18] sm:$0xff]   ;;  %v1126_v31 = vld [vmem:[#allocation7 + $0x60] sm:$0xff]  }
  0x2c   :  { %983 = vmatprep.subr.bf16.mxu0 %v1109_v2  ;;  %v1127_v32 = vld [vmem:[#allocation7 + $0x58] sm:$0xff]   ;;  %v1128_v33 = vld [vmem:[#allocation7 + $0x50] sm:$0xff]   ;;  %v1129_v34 = vld [vmem:[#allocation7 + $0x48] sm:$0xff]  }
  0x2d   :  { %v1130_v35 = vld [vmem:[#allocation7 + $0x40] sm:$0xff]  }
  0x2e   :  { %v882_v37 = vld [vmem:[%s1314_s3] ss:$0 sm:$0xff] }
  0x2f   :  { %984 = vmatpush3.bf16.msra.mxu0 %v1109_v2 }
  0x30   :  { %985 = vmatprep.subr.bf16.mxu0 %v1110_v3 }
  0x33   :  { %986 = vmatpush3.bf16.msra.mxu0 %v1110_v3 }
  0x34   :  { %987 = vmatprep.subr.bf16.mxu0 %v1111_v5 }
  0x37   :  { %988 = vmatpush3.bf16.msra.mxu0 %v1111_v5 }
  0x38   :  { %989 = vmatprep.subr.bf16.mxu0 %v1112_v6 }
  0x3b   :  { %990 = vmatpush3.bf16.msra.mxu0 %v1112_v6 }
  0x3c   :  { %991 = vmatprep.subr.bf16.mxu0 %v1113_v7 }
  0x3f   :  { %992 = vmatpush3.bf16.msra.mxu0 %v1113_v7 }
  0x40   :  { %993 = vmatprep.subr.bf16.mxu0 %v1114_v8 }
  0x43   :  { %994 = vmatpush3.bf16.msra.mxu0 %v1114_v8 }
  0x46   :  { %996 = vmatmul.mubr.bf16.vlgmr.msra.gmra.mxu0 %v1116_v9 }
  0x47   :  { %999 = vmatprep.mubr.bf16.mxu0 %v1117_v10 }
  0x4e   :  { %1000 = vmatmul.mubr.bf16.gmra.mxu0 %v1118_v11 }
  0x4f   :  { %1051 = vmatprep.mubr.msk.bf16.mxu0 %vm260_vm0, %v1267_v12 }
 0x106   :  { %v997_v13 = vpop.f32.mrf.mxu0 }
 0x108   :  { %v199_v14 = vpop.f32.mrf.mxu0 }
 0x10a   :  { %v998_v15 = vpop.f32.mrf.mxu0 }
 0x10b   :  { %v231_v23 = vpack.c.bf16 %v998_v15, %v997_v13 }
 0x10c   :  { %v202_v16 = vpop.f32.mrf.mxu0 }
 0x10d   :  { %v230_v24 = vpack.c.bf16 %v202_v16, %v199_v14 }
 0x10e   :  { %v1001_v17 = vpop.f32.mrf.mxu0 }
 0x110   :  { %v215_v18 = vpop.f32.mrf.mxu0 }
 0x112   :  { %v1002_v19 = vpop.f32.mrf.mxu0 }
 0x113   :  { %v233_v20 = vpack.c.bf16 %v1002_v19, %v1001_v17 }
 0x114   :  { %v218_v21 = vpop.f32.mrf.mxu0 }
 0x115   :  { %v232_v22 = vpack.c.bf16 %v218_v21, %v215_v18  ;;  %1003 = vmatprep.subr.bf16.mxu1 %v233_v20 }
 0x116   :  { %1004 = vmatpush3.bf16.msra.mxu1 %v233_v20 }
 0x117   :  { %1005 = vmatprep.subr.bf16.mxu1 %v232_v22 }
 0x11a   :  { %1006 = vmatpush3.bf16.msra.mxu1 %v232_v22  ;;  %v1132_v22 = vld [vmem:[#allocation7 + $0xb0] sm:$0xff]  }
 0x11b   :  { %1007 = vmatprep.subr.bf16.mxu1 %v231_v23 }
 0x11e   :  { %1008 = vmatpush3.bf16.msra.mxu1 %v231_v23  ;;  %v1133_v23 = vld [vmem:[#allocation7 + $0xa8] sm:$0xff]  }
 0x11f   :  { %1009 = vmatprep.subr.bf16.mxu1 %v230_v24 }
 0x122   :  { %1010 = vmatpush3.bf16.msra.mxu1 %v230_v24  ;;  %v1134_v24 = vld [vmem:[#allocation7 + $0xa0] sm:$0xff]  }
 0x123   :  { %1019 = vmatprep.subr.bf16.mxu1 %v1123_v25 }
 0x125   :  { %1012 = vmatmul.mubr.msk.bf16.vlgmr.msra.gmra.mxu1 %vm260_vm0, %v1273_v26 }
 0x126   :  { %1015 = vmatprep.mubr.msk.bf16.mxu1 %vm260_vm0, %v1275_v27  ;;  %1020 = vmatpush3.bf16.msra.mxu1 %v1123_v25  ;;  %v1135_v25 = vld [vmem:[#allocation7 + $0x98] sm:$0xff]  }
 0x127   :  { %1021 = vmatprep.subr.bf16.mxu1 %v1124_v28 }
 0x12a   :  { %1022 = vmatpush3.bf16.msra.mxu1 %v1124_v28  ;;  %v1136_v28 = vld [vmem:[#allocation7 + $0x90] sm:$0xff]  }
 0x12b   :  { %1023 = vmatprep.subr.bf16.mxu1 %v1125_v29 }
 0x12d   :  { %1016 = vmatmul.mubr.msk.bf16.gmra.mxu1 %vm260_vm0, %v1281_v30 }
 0x12e   :  { %1024 = vmatpush3.bf16.msra.mxu1 %v1125_v29  ;;  %v1137_v29 = vld [vmem:[#allocation7 + $0x88] sm:$0xff]  }
 0x12f   :  { %1025 = vmatprep.subr.bf16.mxu1 %v1126_v31 }
 0x132   :  { %1026 = vmatpush3.bf16.msra.mxu1 %v1126_v31  ;;  %v1138_v31 = vld [vmem:[#allocation7 + $0x80] sm:$0xff]  }
 0x133   :  { %1027 = vmatprep.subr.bf16.mxu1 %v1127_v32 }
 0x136   :  { %1028 = vmatpush3.bf16.msra.mxu1 %v1127_v32 }
 0x137   :  { %1029 = vmatprep.subr.bf16.mxu1 %v1128_v33 }
 0x13a   :  { %1030 = vmatpush3.bf16.msra.mxu1 %v1128_v33  ;;  %v900_v33 = vld [vmem:[%s1314_s3 + $0x1] ss:$0 sm:$0xff] }
 0x13b   :  { %1031 = vmatprep.subr.bf16.mxu1 %v1129_v34 }
 0x13e   :  { %1032 = vmatpush3.bf16.msra.mxu1 %v1129_v34 }
 0x13f   :  { %1033 = vmatprep.subr.bf16.mxu1 %v1130_v35 }
 0x142   :  { %1034 = vmatpush3.bf16.msra.mxu1 %v1130_v35 }
 0x1e5   :  { %v1013_v36 = vpop.f32.mrf.mxu1 }
 0x1e6   :  { %v316_v40 = vadd.f32 %v1013_v36, %v882_v37 }
 0x1e7   :  { %v307_v38 = vpop.f32.mrf.mxu1 }
 0x1e8   :  { %v308_v39 = vadd.f32 %v882_v37, %v307_v38  ;;  %v348_v47 = vmul.f32 0.01, %v316_v40  ;;  %vm340_vm3 = vcmp.gt.f32.partialorder %v316_v40, 0.0 }
 0x1e9   :  { %v1014_v41 = vpop.f32.mrf.mxu1 }
 0x1ea   :  { %v319_v42 = vadd.f32 %v1014_v41, %v882_v37  ;;  %v346_v44 = vmul.f32 0.01, %v308_v39  ;;  %vm338_vm2 = vcmp.gt.f32.partialorder %v308_v39, 0.0  ;;  %v356_v55 = vsel %vm340_vm3, %v316_v40, %v348_v47 }
 0x1eb   :  { %v310_v43 = vpop.f32.mrf.mxu1 }
 0x1ec   :  { %vm341_vm1 = vcmp.gt.f32.partialorder %v319_v42, 0.0  ;;  %v349_v45 = vmul.f32 0.01, %v319_v42  ;;  %v311_v46 = vadd.f32 %v882_v37, %v310_v43  ;;  %v354_v53 = vsel %vm338_vm2, %v308_v39, %v346_v44 }
 0x1ed   :  { %v1017_v48 = vpop.f32.mrf.mxu1 }
 0x1ee   :  { %vm339_vm4 = vcmp.gt.f32.partialorder %v311_v46, 0.0  ;;  %v347_v49 = vmul.f32 0.01, %v311_v46  ;;  %v357_v50 = vsel %vm341_vm1, %v319_v42, %v349_v45  ;;  %v332_v56 = vadd.f32 %v1017_v48, %v882_v37 }
 0x1ef   :  { %v323_v51 = vpop.f32.mrf.mxu1  ;;  %v363_v59 = vpack.c.bf16 %v357_v50, %v356_v55 }
 0x1f0   :  { %v324_v52 = vadd.f32 %v882_v37, %v323_v51  ;;  %v355_v54 = vsel %vm339_vm4, %v311_v46, %v347_v49  ;;  %v352_v1 = vmul.f32 0.01, %v332_v56  ;;  %vm344_vm7 = vcmp.gt.f32.partialorder %v332_v56, 0.0 }
 0x1f1   :  { %v1018_v57 = vpop.f32.mrf.mxu1  ;;  %v362_v58 = vpack.c.bf16 %v355_v54, %v354_v53 }
 0x1f2   :  { %v335_v60 = vadd.f32 %v1018_v57, %v882_v37  ;;  %v350_v62 = vmul.f32 0.01, %v324_v52  ;;  %vm342_vm6 = vcmp.gt.f32.partialorder %v324_v52, 0.0  ;;  %v360_v7 = vsel %vm344_vm7, %v332_v56, %v352_v1 }
 0x1f3   :  { %v326_v61 = vpop.f32.mrf.mxu1  ;;  %1035 = vmatprep.mubr.bf16.mxu1 %v362_v58 }
 0x1f4   :  { %vm345_vm5 = vcmp.gt.f32.partialorder %v335_v60, 0.0  ;;  %v353_v63 = vmul.f32 0.01, %v335_v60  ;;  %v327_v0 = vadd.f32 %v882_v37, %v326_v61  ;;  %1036 = vmatmul.mubr.bf16.vlgmr.msra.gmra.mxu1 %v363_v59  ;;  %v358_v4 = vsel %vm342_vm6, %v324_v52, %v350_v62 }
 0x1f6   :  { %vm343_vm8 = vcmp.gt.f32.partialorder %v327_v0, 0.0  ;;  %v351_v2 = vmul.f32 0.01, %v327_v0  ;;  %v361_v3 = vsel %vm345_vm5, %v335_v60, %v353_v63 }
 0x1f7   :  { %v365_v8 = vpack.c.bf16 %v361_v3, %v360_v7 }
 0x1f8   :  { %v359_v5 = vsel %vm343_vm8, %v327_v0, %v351_v2 }
 0x1f9   :  { %v364_v6 = vpack.c.bf16 %v359_v5, %v358_v4 }
 0x1fb   :  { %1039 = vmatprep.mubr.bf16.mxu1 %v364_v6 }
 0x1fc   :  { %1040 = vmatmul.mubr.bf16.gmra.mxu1 %v365_v8 }
 0x1fd   :  { %1091 = vmatprep.mubr.msk.bf16.mxu1 %vm260_vm0, %v1267_v12  ;;  %v1131_v12 = vld [vmem:[#allocation7 + $0xb8] sm:$0xff]  }
 0x2b4   :  { %v1037_v9 = vpop.f32.mrf.mxu1 }
 0x2b6   :  { %v467_v10 = vpop.f32.mrf.mxu1 }
 0x2b8   :  { %v1038_v11 = vpop.f32.mrf.mxu1 }
 0x2b9   :  { %v499_v20 = vpack.c.bf16 %v1038_v11, %v1037_v9 }
 0x2ba   :  { %v470_v13 = vpop.f32.mrf.mxu1 }
 0x2bb   :  { %v498_v21 = vpack.c.bf16 %v470_v13, %v467_v10 }
 0x2bc   :  { %v1041_v14 = vpop.f32.mrf.mxu1 }
 0x2be   :  { %v483_v15 = vpop.f32.mrf.mxu1 }
 0x2c0   :  { %v1042_v16 = vpop.f32.mrf.mxu1 }
 0x2c1   :  { %v501_v17 = vpack.c.bf16 %v1042_v16, %v1041_v14 }
 0x2c2   :  { %v486_v18 = vpop.f32.mrf.mxu1 }
 0x2c3   :  { %v500_v19 = vpack.c.bf16 %v486_v18, %v483_v15  ;;  %1043 = vmatprep.subr.bf16.mxu0 %v501_v17  ;;  %v914_v18 = vld [vmem:[%s1314_s3 + $0x2] ss:$0 sm:$0xff]  ;;  %s1230_s3 = smov [#allocation8]  }
 0x2c4   :  { %1044 = vmatpush3.bf16.msra.mxu0 %v501_v17  ;;  %s857_s9 = sshll.u32 %s1230_s3, 4  ;;  %s858_s9 = int_to_ptr.vmem [resolvable:$true] %s857_s9 }
 0x2c5   :  { %1045 = vmatprep.subr.bf16.mxu0 %v500_v19  ;;  %s1199_s10 = scalar_lea.vmem %s858_s9, 1024  ;;  %p1204_p2 = scmp.lt.s32.totalorder %s858_s9, %s858_s9 }
 0x2c6   :  { %p1200_p1 = scmp.ne.s32.totalorder %s858_s9, %s1199_s10  ;;  %p1205_p3 = scmp.lt.s32.totalorder %s1199_s10, %s1199_s10 }
 0x2c8   :  { %1046 = vmatpush3.bf16.msra.mxu0 %v500_v19  ;;  %p1206_p4 = por %p1205_p3, %p1204_p2 }
 0x2c9   :  { %1047 = vmatprep.subr.bf16.mxu0 %v499_v20 }
 0x2ca   :  { %p1207_p5 = pnand %p1206_p4, %p1200_p1 }
 0x2cc   :  { %1048 = vmatpush3.bf16.msra.mxu0 %v499_v20 }
 0x2cd   :  { %1049 = vmatprep.subr.bf16.mxu0 %v498_v21 }
 0x2d0   :  { %1050 = vmatpush3.bf16.msra.mxu0 %v498_v21 }
 0x2d1   :  { %1059 = vmatprep.subr.bf16.mxu0 %v1131_v12 }
 0x2d3   :  { %1052 = vmatmul.mubr.msk.bf16.vlgmr.msra.gmra.mxu0 %vm260_vm0, %v1273_v26 }
 0x2d4   :  { %1055 = vmatprep.mubr.msk.bf16.mxu0 %vm260_vm0, %v1275_v27  ;;  %1060 = vmatpush3.bf16.msra.mxu0 %v1131_v12 }
 0x2d5   :  { %1061 = vmatprep.subr.bf16.mxu0 %v1132_v22 }
 0x2d8   :  { %1062 = vmatpush3.bf16.msra.mxu0 %v1132_v22 }
 0x2d9   :  { %1063 = vmatprep.subr.bf16.mxu0 %v1133_v23 }
 0x2db   :  { %1056 = vmatmul.mubr.msk.bf16.gmra.mxu0 %vm260_vm0, %v1281_v30 }
 0x2dc   :  { %1064 = vmatpush3.bf16.msra.mxu0 %v1133_v23 }
 0x2dd   :  { %1065 = vmatprep.subr.bf16.mxu0 %v1134_v24 }
 0x2e0   :  { %1066 = vmatpush3.bf16.msra.mxu0 %v1134_v24 }
 0x2e1   :  { %1067 = vmatprep.subr.bf16.mxu0 %v1135_v25 }
 0x2e4   :  { %1068 = vmatpush3.bf16.msra.mxu0 %v1135_v25 }
 0x2e5   :  { %1069 = vmatprep.subr.bf16.mxu0 %v1136_v28 }
 0x2e8   :  { %1070 = vmatpush3.bf16.msra.mxu0 %v1136_v28 }
 0x2e9   :  { %1071 = vmatprep.subr.bf16.mxu0 %v1137_v29 }
 0x2ec   :  { %1072 = vmatpush3.bf16.msra.mxu0 %v1137_v29 }
 0x2ed   :  { %1073 = vmatprep.subr.bf16.mxu0 %v1138_v31 }
 0x2f0   :  { %1074 = vmatpush3.bf16.msra.mxu0 %v1138_v31 }
 0x393   :  { %v1053_v32 = vpop.f32.mrf.mxu0 }
 0x394   :  { %v551_v36 = vadd.f32 %v1053_v32, %v900_v33 }
 0x395   :  { %v542_v34 = vpop.f32.mrf.mxu0 }
 0x396   :  { %v543_v35 = vadd.f32 %v900_v33, %v542_v34  ;;  %v583_v43 = vmul.f32 0.01, %v551_v36  ;;  %vm575_vm11 = vcmp.gt.f32.partialorder %v551_v36, 0.0 }
 0x397   :  { %v1054_v37 = vpop.f32.mrf.mxu0 }
 0x398   :  { %v554_v38 = vadd.f32 %v1054_v37, %v900_v33  ;;  %v581_v40 = vmul.f32 0.01, %v543_v35  ;;  %vm573_vm10 = vcmp.gt.f32.partialorder %v543_v35, 0.0  ;;  %v591_v51 = vsel %vm575_vm11, %v551_v36, %v583_v43 }
 0x399   :  { %v545_v39 = vpop.f32.mrf.mxu0 }
 0x39a   :  { %vm576_vm9 = vcmp.gt.f32.partialorder %v554_v38, 0.0  ;;  %v584_v41 = vmul.f32 0.01, %v554_v38  ;;  %v546_v42 = vadd.f32 %v900_v33, %v545_v39  ;;  %v589_v49 = vsel %vm573_vm10, %v543_v35, %v581_v40 }
 0x39b   :  { %v1057_v44 = vpop.f32.mrf.mxu0 }
 0x39c   :  { %vm574_vm12 = vcmp.gt.f32.partialorder %v546_v42, 0.0  ;;  %v582_v45 = vmul.f32 0.01, %v546_v42  ;;  %v592_v46 = vsel %vm576_vm9, %v554_v38, %v584_v41  ;;  %v567_v52 = vadd.f32 %v1057_v44, %v900_v33 }
 0x39d   :  { %v558_v47 = vpop.f32.mrf.mxu0  ;;  %v598_v55 = vpack.c.bf16 %v592_v46, %v591_v51 }
 0x39e   :  { %v559_v48 = vadd.f32 %v900_v33, %v558_v47  ;;  %v590_v50 = vsel %vm574_vm12, %v546_v42, %v582_v45  ;;  %v587_v61 = vmul.f32 0.01, %v567_v52  ;;  %vm579_vm15 = vcmp.gt.f32.partialorder %v567_v52, 0.0 }
 0x39f   :  { %v1058_v53 = vpop.f32.mrf.mxu0  ;;  %v597_v54 = vpack.c.bf16 %v590_v50, %v589_v49 }
 0x3a0   :  { %v570_v56 = vadd.f32 %v1058_v53, %v900_v33  ;;  %v585_v58 = vmul.f32 0.01, %v559_v48  ;;  %vm577_vm14 = vcmp.gt.f32.partialorder %v559_v48, 0.0  ;;  %v595_v3 = vsel %vm579_vm15, %v567_v52, %v587_v61 }
 0x3a1   :  { %v561_v57 = vpop.f32.mrf.mxu0  ;;  %1075 = vmatprep.mubr.bf16.mxu0 %v597_v54 }
 0x3a2   :  { %vm580_vm13 = vcmp.gt.f32.partialorder %v570_v56, 0.0  ;;  %v588_v59 = vmul.f32 0.01, %v570_v56  ;;  %v562_v60 = vadd.f32 %v900_v33, %v561_v57  ;;  %1076 = vmatmul.mubr.bf16.vlgmr.msra.gmra.mxu0 %v598_v55  ;;  %v593_v0 = vsel %vm577_vm14, %v559_v48, %v585_v58 }
 0x3a4   :  { %vm578_vm1 = vcmp.gt.f32.partialorder %v562_v60, 0.0  ;;  %v586_v62 = vmul.f32 0.01, %v562_v60  ;;  %v596_v63 = vsel %vm580_vm13, %v570_v56, %v588_v59 }
 0x3a5   :  { %v600_v4 = vpack.c.bf16 %v596_v63, %v595_v3 }
 0x3a6   :  { %v594_v1 = vsel %vm578_vm1, %v562_v60, %v586_v62 }
 0x3a7   :  { %v599_v2 = vpack.c.bf16 %v594_v1, %v593_v0 }
 0x3a9   :  { %1079 = vmatprep.mubr.bf16.mxu0 %v599_v2 }
 0x3aa   :  { %1080 = vmatmul.mubr.bf16.gmra.mxu0 %v600_v4 }
 0x462   :  { %v1077_v5 = vpop.f32.mrf.mxu0 }
 0x464   :  { %v702_v6 = vpop.f32.mrf.mxu0 }
 0x466   :  { %v1078_v7 = vpop.f32.mrf.mxu0 }
 0x467   :  { %v734_v16 = vpack.c.bf16 %v1078_v7, %v1077_v5 }
 0x468   :  { %v705_v8 = vpop.f32.mrf.mxu0 }
 0x469   :  { %v733_v17 = vpack.c.bf16 %v705_v8, %v702_v6 }
 0x46a   :  { %v1081_v9 = vpop.f32.mrf.mxu0 }
 0x46c   :  { %v718_v10 = vpop.f32.mrf.mxu0 }
 0x46e   :  { %v1082_v11 = vpop.f32.mrf.mxu0 }
 0x46f   :  { %v736_v13 = vpack.c.bf16 %v1082_v11, %v1081_v9 }
 0x470   :  { %v721_v14 = vpop.f32.mrf.mxu0 }
 0x471   :  { %v735_v15 = vpack.c.bf16 %v721_v14, %v718_v10  ;;  %1083 = vmatprep.subr.bf16.mxu1 %v736_v13 }
 0x472   :  { %1084 = vmatpush3.bf16.msra.mxu1 %v736_v13 }
 0x473   :  { %1085 = vmatprep.subr.bf16.mxu1 %v735_v15 }
 0x476   :  { %1086 = vmatpush3.bf16.msra.mxu1 %v735_v15 }
 0x477   :  { %1087 = vmatprep.subr.bf16.mxu1 %v734_v16 }
 0x47a   :  { %1088 = vmatpush3.bf16.msra.mxu1 %v734_v16 }
 0x47b   :  { %1089 = vmatprep.subr.bf16.mxu1 %v733_v17 }
 0x47e   :  { %1090 = vmatpush3.bf16.msra.mxu1 %v733_v17 }
 0x481   :  { %1092 = vmatmul.mubr.msk.bf16.vlgmr.msra.gmra.mxu1 %vm260_vm0, %v1273_v26 }
 0x482   :  { %1095 = vmatprep.mubr.msk.bf16.mxu1 %vm260_vm0, %v1275_v27 }
 0x489   :  { %1096 = vmatmul.mubr.msk.bf16.gmra.mxu1 %vm260_vm0, %v1281_v30 }
 0x541   :  { %v1093_v19 = vpop.f32.mrf.mxu1 }
 0x542   :  { %v786_v20 = vadd.f32 %v1093_v19, %v914_v18 }
 0x543   :  { %v777_v21 = vpop.f32.mrf.mxu1 }
 0x544   :  { %v778_v12 = vadd.f32 %v914_v18, %v777_v21  ;;  %v818_v22 = vmul.f32 0.01, %v786_v20  ;;  %vm810_vm2 = vcmp.gt.f32.partialorder %v786_v20, 0.0 }
 0x545   :  { %v1094_v23 = vpop.f32.mrf.mxu1 }
 0x546   :  { %v789_v24 = vadd.f32 %v1094_v23, %v914_v18  ;;  %v816_v26 = vmul.f32 0.01, %v778_v12  ;;  %v826_v29 = vsel %vm810_vm2, %v786_v20, %v818_v22  ;;  %vm808_vm4 = vcmp.gt.f32.partialorder %v778_v12, 0.0 }
 0x547   :  { %v780_v25 = vpop.f32.mrf.mxu1 }
 0x548   :  { %vm811_vm3 = vcmp.gt.f32.partialorder %v789_v24, 0.0  ;;  %v819_v28 = vmul.f32 0.01, %v789_v24  ;;  %v781_v27 = vadd.f32 %v914_v18, %v780_v25  ;;  %v824_v36 = vsel %vm808_vm4, %v778_v12, %v816_v26 }
 0x549   :  { %v1097_v30 = vpop.f32.mrf.mxu1 }
 0x54a   :  { %v827_v31 = vsel %vm811_vm3, %v789_v24, %v819_v28  ;;  %vm809_vm0 = vcmp.gt.f32.partialorder %v781_v27, 0.0  ;;  %v817_v32 = vmul.f32 0.01, %v781_v27  ;;  %v802_v33 = vadd.f32 %v1097_v30, %v914_v18 }
 0x54b   :  { %v833_v34 = vpack.c.bf16 %v827_v31, %v826_v29  ;;  %v793_v35 = vpop.f32.mrf.mxu1 }
 0x54c   :  { %v825_v37 = vsel %vm809_vm0, %v781_v27, %v817_v32  ;;  %v794_v38 = vadd.f32 %v914_v18, %v793_v35  ;;  %v822_v43 = vmul.f32 0.01, %v802_v33  ;;  %vm814_vm5 = vcmp.gt.f32.partialorder %v802_v33, 0.0 }
 0x54d   :  { %v838_v39 = vunpack.c.l.bf16 %v833_v34  ;;  %v839_v40 = vunpack.c.h.bf16 %v833_v34  ;;  %v832_v41 = vpack.c.bf16 %v825_v37, %v824_v36  ;;  %v1098_v42 = vpop.f32.mrf.mxu1 }
 0x54e   :  { %v805_v44 = vadd.f32 %v1098_v42, %v914_v18  ;;  %v820_v48 = vmul.f32 0.01, %v794_v38  ;;  %vm812_vm7 = vcmp.gt.f32.partialorder %v794_v38, 0.0  ;;  %v830_v51 = vsel %vm814_vm5, %v802_v33, %v822_v43 }
 0x54f   :  { %846 = vst [vmem:[#allocation8 + $0x10] sm:$0xff] %v838_v39  ;;  %847 = vst [vmem:[#allocation8 + $0x18] sm:$0xff] %v839_v40  ;;  %v836_v45 = vunpack.c.l.bf16 %v832_v41  ;;  %v837_v46 = vunpack.c.h.bf16 %v832_v41  ;;  %v796_v47 = vpop.f32.mrf.mxu1 }
 0x550   :  { %vm815_vm6 = vcmp.gt.f32.partialorder %v805_v44, 0.0  ;;  %v823_v49 = vmul.f32 0.01, %v805_v44  ;;  %v797_v50 = vadd.f32 %v914_v18, %v796_v47  ;;  %v828_v55 = vsel %vm812_vm7, %v794_v38, %v820_v48 }
 0x551   :  { %844 = vst [vmem:[#allocation8] sm:$0xff] %v836_v45  ;;  %845 = vst [vmem:[#allocation8 + $0x8] sm:$0xff] %v837_v46 }
 0x552   :  { %v831_v52 = vsel %vm815_vm6, %v805_v44, %v823_v49  ;;  %vm813_vm8 = vcmp.gt.f32.partialorder %v797_v50, 0.0  ;;  %v821_v53 = vmul.f32 0.01, %v797_v50 }
 0x553   :  { %v835_v54 = vpack.c.bf16 %v831_v52, %v830_v51 }
 0x554   :  { %v829_v56 = vsel %vm813_vm8, %v797_v50, %v821_v53 }
 0x555   :  { %v842_v57 = vunpack.c.l.bf16 %v835_v54  ;;  %v843_v58 = vunpack.c.h.bf16 %v835_v54  ;;  %v834_v59 = vpack.c.bf16 %v829_v56, %v828_v55 }
 0x557   :  { %850 = vst [vmem:[#allocation8 + $0x30] sm:$0xff] %v842_v57  ;;  %851 = vst [vmem:[#allocation8 + $0x38] sm:$0xff] %v843_v58  ;;  %v840_v60 = vunpack.c.l.bf16 %v834_v59  ;;  %v841_v61 = vunpack.c.h.bf16 %v834_v59 }
 0x559   :  { %848 = vst [vmem:[#allocation8 + $0x20] sm:$0xff] %v840_v60  ;;  %849 = vst [vmem:[#allocation8 + $0x28] sm:$0xff] %v841_v61 }
 0x55a   :  { %1210 = shalt.err (!%p1207_p5)
}
 0x55b   :  { %s1231_s11 = smov 128   ;;  %s1232_s12 = smov 8  }
 0x55c   :  { %863 = dma.vmem_to_hbm [thread:$0]  %s858_s9, 1024, %s1315_s4, [#allocation4], %s1231_s11, %s1231_s11, %s1232_s12  }
 0x55d   :  { %1223 = dma.done.wait [#allocation4], 1024  }
 0x55e   :  { %1224 = vsyncadd [#allocation4], 4294966272 }
 0x55f   :  { %867 = vsyncpa [#allocation3], 1 }
 0x560   :  { %868 = vsyncpa [#allocation6], 1 }
 0x561   :  { %869 = vsyncpa [#allocation4], 1 }

</bundles_post_ra>
